<compile_context>
chip_gen: v7x
topology: tpu7x:2x2x1
jax: 0.10.0
libtpu: 0.0.40
codegen_flags: <defaults>
</compile_context>

<pallas_src>
import functools

import jax
import jax.numpy as jnp
from jax.experimental import pallas as pl
from jax.experimental.pallas import tpu as pltpu


# ---------------------------------------------------------------------------
# Kernel 1: fused channel-wise mean over N for both feature maps.
# feat blocks: (1, C, tN)  ->  resident accumulators (1, C, 1) in f32.
# ---------------------------------------------------------------------------
def _mean_kernel(f1_ref, f2_ref, s1_ref, s2_ref, *, inv_n):
    k = pl.program_id(1)

    @pl.when(k == 0)
    def _():
        s1_ref[...] = jnp.zeros_like(s1_ref)
        s2_ref[...] = jnp.zeros_like(s2_ref)

    s1_ref[...] += jnp.sum(f1_ref[...].astype(jnp.float32), axis=-1, keepdims=True)
    s2_ref[...] += jnp.sum(f2_ref[...].astype(jnp.float32), axis=-1, keepdims=True)

    @pl.when(k == pl.num_programs(1) - 1)
    def _():
        s1_ref[...] *= inv_n
        s2_ref[...] *= inv_n


# ---------------------------------------------------------------------------
# Kernel 2: tiny 2-layer (conv1x1 + BN + ReLU) MLP on pooled vectors + gate.
# BN scale is pre-folded into the weights, so each layer is: relu(x @ W + shift).
# Gate is the literal spec expression exp(g) / (exp(g) + exp(g)).
# ---------------------------------------------------------------------------
def _mlp_gate_kernel(s1_ref, s2_ref,
                     w1a_ref, sh1a_ref, w1b_ref, sh1b_ref,
                     w2a_ref, sh2a_ref, w2b_ref, sh2b_ref,
                     m1_ref, m2_ref):
    def two_layers(s, wa_ref, sha_ref, wb_ref, shb_ref):
        h = jnp.dot(s, wa_ref[...], preferred_element_type=jnp.float32)
        h = jnp.maximum(h + sha_ref[...], 0.0)
        y = jnp.dot(h, wb_ref[...], preferred_element_type=jnp.float32)
        return jnp.maximum(y + shb_ref[...], 0.0)

    g1 = two_layers(s1_ref[...].astype(jnp.float32),
                    w1a_ref, sh1a_ref, w1b_ref, sh1b_ref)
    g2 = two_layers(s2_ref[...].astype(jnp.float32),
                    w2a_ref, sh2a_ref, w2b_ref, sh2b_ref)

    e1 = jnp.exp(g1)
    e2 = jnp.exp(g2)
    m1_ref[...] = e1 / (e1 + e1)   # literal translation of the module (== 0.5)
    m2_ref[...] = e2 / (e2 + e2)


# ---------------------------------------------------------------------------
# Kernel 3: gated elementwise combine in native NCL layout (lane-dense over N).
# ---------------------------------------------------------------------------
def _combine_kernel(m1_ref, m2_ref, f1_ref, f2_ref, o_ref):
    m1 = m1_ref[...]                                   # (1, C, 1) f32
    m2 = m2_ref[...]
    y = (f1_ref[...].astype(jnp.float32) * m1
         + f2_ref[...].astype(jnp.float32) * m2)
    o_ref[...] = y.astype(o_ref.dtype)


# ---------------------------------------------------------------------------
# Wrapper-side glue (parameter folding, tile selection).
# ---------------------------------------------------------------------------
def _fold_conv_bn(conv, bn, eps=1e-5):
    """Fold Conv1d(k=1) bias + inference BatchNorm into (W_folded, shift)."""
    w = conv["w"]                                      # (Cout, Cin, 1)
    b = conv["b"]                                      # (Cout,)
    cout, cin = w.shape[0], w.shape[1]
    scale = bn["gamma"] / jnp.sqrt(bn["var"] + eps)    # (Cout,)
    w_f = (w.reshape(cout, cin).T * scale[None, :]).astype(jnp.float32)   # (Cin, Cout)
    shift = ((b - bn["mean"]) * scale + bn["beta"]).reshape(1, cout).astype(jnp.float32)
    return w_f, shift


def _pick_tile_n(n, c, itemsize):
    """Largest lane-dense tile (multiple of 128) dividing N within a VMEM budget."""
    for t in (2048, 1024, 512, 256, 128):
        if n % t == 0 and c * t * itemsize <= (4 << 20):
            return t
    return n  # small or non-128-divisible N: use the full extent as one block


def adaptive_feature_aggregation(feat1, feat2, params, eps=1e-5):
    """feat1, feat2: (B, C, N).  params: {'convs1','bns1','convs2','bns2'}."""
    B, C, N = feat1.shape
    tn = _pick_tile_n(N, C, jnp.dtype(feat1.dtype).itemsize)
    n_tiles = N // tn

    # ---- 1) fused mean over N for both feats ------------------------------
    s1, s2 = pl.pallas_call(
        functools.partial(_mean_kernel, inv_n=float(1.0 / N)),
        out_shape=(jax.ShapeDtypeStruct((B, C, 1), jnp.float32),
                   jax.ShapeDtypeStruct((B, C, 1), jnp.float32)),
        grid=(B, n_tiles),
        in_specs=[pl.BlockSpec((1, C, tn), lambda b, k: (b, 0, k)),
                  pl.BlockSpec((1, C, tn), lambda b, k: (b, 0, k))],
        out_specs=(pl.BlockSpec((1, C, 1), lambda b, k: (b, 0, 0)),
                   pl.BlockSpec((1, C, 1), lambda b, k: (b, 0, 0))),
        compiler_params=pltpu.CompilerParams(
            dimension_semantics=("parallel", "arbitrary"),
            vmem_limit_bytes=64 << 20),
    )(feat1, feat2)

    # ---- 2) tiny MLP + gate on the (B, C) pooled vectors -------------------
    w1a, sh1a = _fold_conv_bn(params["convs1"][0], params["bns1"][0], eps)
    w1b, sh1b = _fold_conv_bn(params["convs1"][1], params["bns1"][1], eps)
    w2a, sh2a = _fold_conv_bn(params["convs2"][0], params["bns2"][0], eps)
    w2b, sh2b = _fold_conv_bn(params["convs2"][1], params["bns2"][1], eps)

    # pad the (tiny) batch dim to a sublane multiple; pad/slice cost is B*C elems.
    Bp = ((B + 7) // 8) * 8
    s1_2d = jnp.pad(s1.reshape(B, C), ((0, Bp - B), (0, 0)))
    s2_2d = jnp.pad(s2.reshape(B, C), ((0, Bp - B), (0, 0)))

    m1p, m2p = pl.pallas_call(
        _mlp_gate_kernel,
        out_shape=(jax.ShapeDtypeStruct((Bp, C), jnp.float32),
                   jax.ShapeDtypeStruct((Bp, C), jnp.float32)),
    )(s1_2d, s2_2d, w1a, sh1a, w1b, sh1b, w2a, sh2a, w2b, sh2b)

    m1 = m1p[:B].reshape(B, C, 1)
    m2 = m2p[:B].reshape(B, C, 1)

    # ---- 3) gated combine, lane-dense over N --------------------------------
    out = pl.pallas_call(
        _combine_kernel,
        out_shape=jax.ShapeDtypeStruct((B, C, N), feat1.dtype),
        grid=(B, n_tiles),
        in_specs=[pl.BlockSpec((1, C, 1), lambda b, k: (b, 0, 0)),
                  pl.BlockSpec((1, C, 1), lambda b, k: (b, 0, 0)),
                  pl.BlockSpec((1, C, tn), lambda b, k: (b, 0, k)),
                  pl.BlockSpec((1, C, tn), lambda b, k: (b, 0, k))],
        out_specs=pl.BlockSpec((1, C, tn), lambda b, k: (b, 0, k)),
        compiler_params=pltpu.CompilerParams(
            dimension_semantics=("parallel", "parallel"),
            vmem_limit_bytes=64 << 20),
    )(m1, m2, feat1, feat2)

    return out


# ---------------------------------------------------------------------------
# Pure-JAX reference (inference-mode BatchNorm), mirrors the PyTorch forward.
# ---------------------------------------------------------------------------
def _reference(feat1, feat2, params, eps=1e-5):
    def conv_bn_relu(s, conv, bn):
        cout, cin = conv["w"].shape[0], conv["w"].shape[1]
        y = jnp.einsum('oc,bcl->bol', conv["w"].reshape(cout, cin), s) \
            + conv["b"][None, :, None]
        y = (y - bn["mean"][None, :, None]) / jnp.sqrt(bn["var"][None, :, None] + eps) \
            * bn["gamma"][None, :, None] + bn["beta"][None, :, None]
        return jnp.maximum(y, 0.0)

    s1 = feat1.mean(axis=-1, keepdims=True)
    s2 = feat2.mean(axis=-1, keepdims=True)
    for i in range(2):
        s1 = conv_bn_relu(s1, params["convs1"][i], params["bns1"][i])
        s2 = conv_bn_relu(s2, params["convs2"][i], params["bns2"][i])
    m1 = jnp.exp(s1) / (jnp.exp(s1) + jnp.exp(s1))
    m2 = jnp.exp(s2) / (jnp.exp(s2) + jnp.exp(s2))
    return feat1 * m1 + feat2 * m2


if __name__ == "__main__":
    key = jax.random.PRNGKey(0)
    B, C, N = 2, 4, 16

    key, k1, k2 = jax.random.split(key, 3)
    feat1 = jax.random.normal(k1, (B, C, N), dtype=jnp.float32)
    feat2 = jax.random.normal(k2, (B, C, N), dtype=jnp.float32)

    def make_layer(key):
        kw, kb, kg, kbe, km, kv = jax.random.split(key, 6)
        conv = {"w": jax.random.normal(kw, (C, C, 1), dtype=jnp.float32) * 0.1,
                "b": jax.random.normal(kb, (C,), dtype=jnp.float32) * 0.1}
        bn = {"gamma": 1.0 + 0.1 * jax.random.normal(kg, (C,), dtype=jnp.float32),
              "beta": 0.1 * jax.random.normal(kbe, (C,), dtype=jnp.float32),
              "mean": 0.1 * jax.random.normal(km, (C,), dtype=jnp.float32),
              "var": 0.5 + jnp.abs(jax.random.normal(kv, (C,), dtype=jnp.float32))}
        return conv, bn

    params = {"convs1": [], "bns1": [], "convs2": [], "bns2": []}
    for name_c, name_b in (("convs1", "bns1"), ("convs2", "bns2")):
        for _ in range(2):
            key, sub = jax.random.split(key)
            conv, bn = make_layer(sub)
            params[name_c].append(conv)
            params[name_b].append(bn)

    out = adaptive_feature_aggregation(feat1, feat2, params)
    out = jax.block_until_ready(out)

    ref = _reference(feat1, feat2, params)
    assert out.shape == (B, C, N)
    assert jnp.allclose(out, ref, atol=1e-5, rtol=1e-5)

    print("KERNEL_OK")
</pallas_src>

<mosaic_0001>
module attributes {stable_mosaic.version = 11 : i64} {
  func.func @_mean_kernel(%arg0: i32, %arg1: i32, %arg2: memref<1x4x16xf32, #tpu.memory_space<vmem>>, %arg3: memref<1x4x16xf32, #tpu.memory_space<vmem>>, %arg4: memref<1x4x1xf32, #tpu.memory_space<vmem>>, %arg5: memref<1x4x1xf32, #tpu.memory_space<vmem>>) attributes {dimension_semantics = [#tpu.dimension_semantics<parallel>, #tpu.dimension_semantics<arbitrary>], iteration_bounds = array<i64: 2, 1>, scalar_prefetch = 0 : i64, scratch_operands = 0 : i64, tpu.core_type = #tpu.core_type<tc>, window_params = [{transform_indices = @transform_0, window_bounds = array<i64: 1, 4, 16>}, {transform_indices = @transform_1, window_bounds = array<i64: 1, 4, 16>}, {transform_indices = @transform_2, window_bounds = array<i64: 1, 4, 1>}, {transform_indices = @transform_3, window_bounds = array<i64: 1, 4, 1>}]} {
    %c0_i32 = arith.constant 0 : i32
    %0 = arith.cmpi eq, %arg1, %c0_i32 : i32
    %1 = arith.extui %0 : i1 to i32
    %c0_i32_0 = arith.constant 0 : i32
    %2 = arith.cmpi ne, %1, %c0_i32_0 : i32
    scf.if %2 {
      %cst_21 = arith.constant 0.000000e+00 : f32
      %18 = vector.broadcast %cst_21 : f32 to vector<1x4x1xf32>
      %c0_22 = arith.constant 0 : index
      %c0_23 = arith.constant 0 : index
      %c0_24 = arith.constant 0 : index
      %19 = vector.load %arg4[%c0_22, %c0_23, %c0_24] : memref<1x4x1xf32, #tpu.memory_space<vmem>>, vector<1x4x1xf32>
      tpu.vector_store %arg4[%c0_22, %c0_23, %c0_24], %18 {strides = array<i32>} : memref<1x4x1xf32, #tpu.memory_space<vmem>>, vector<1x4x1xf32>,
      %cst_25 = arith.constant 0.000000e+00 : f32
      %20 = vector.broadcast %cst_25 : f32 to vector<1x4x1xf32>
      %c0_26 = arith.constant 0 : index
      %c0_27 = arith.constant 0 : index
      %c0_28 = arith.constant 0 : index
      %21 = vector.load %arg5[%c0_26, %c0_27, %c0_28] : memref<1x4x1xf32, #tpu.memory_space<vmem>>, vector<1x4x1xf32>
      tpu.vector_store %arg5[%c0_26, %c0_27, %c0_28], %20 {strides = array<i32>} : memref<1x4x1xf32, #tpu.memory_space<vmem>>, vector<1x4x1xf32>,
    } else {
    }
    %c0 = arith.constant 0 : index
    %c0_1 = arith.constant 0 : index
    %c0_2 = arith.constant 0 : index
    %3 = vector.load %arg4[%c0, %c0_1, %c0_2] : memref<1x4x1xf32, #tpu.memory_space<vmem>>, vector<1x4x1xf32>
    %c0_3 = arith.constant 0 : index
    %c0_4 = arith.constant 0 : index
    %c0_5 = arith.constant 0 : index
    %4 = vector.load %arg2[%c0_3, %c0_4, %c0_5] : memref<1x4x16xf32, #tpu.memory_space<vmem>>, vector<1x4x16xf32>
    %cst = arith.constant dense<0.000000e+00> : vector<1x4xf32>
    %5 = vector.multi_reduction <add>, %4, %cst [2] : vector<1x4x16xf32> to vector<1x4xf32>
    %6 = vector.shape_cast %5 : vector<1x4xf32> to vector<1x4x1xf32>
    %7 = arith.addf %3, %6 : vector<1x4x1xf32>
    %c0_6 = arith.constant 0 : index
    %c0_7 = arith.constant 0 : index
    %c0_8 = arith.constant 0 : index
    %8 = vector.load %arg4[%c0_6, %c0_7, %c0_8] : memref<1x4x1xf32, #tpu.memory_space<vmem>>, vector<1x4x1xf32>
    tpu.vector_store %arg4[%c0_6, %c0_7, %c0_8], %7 {strides = array<i32>} : memref<1x4x1xf32, #tpu.memory_space<vmem>>, vector<1x4x1xf32>,
    %c0_9 = arith.constant 0 : index
    %c0_10 = arith.constant 0 : index
    %c0_11 = arith.constant 0 : index
    %9 = vector.load %arg5[%c0_9, %c0_10, %c0_11] : memref<1x4x1xf32, #tpu.memory_space<vmem>>, vector<1x4x1xf32>
    %c0_12 = arith.constant 0 : index
    %c0_13 = arith.constant 0 : index
    %c0_14 = arith.constant 0 : index
    %10 = vector.load %arg3[%c0_12, %c0_13, %c0_14] : memref<1x4x16xf32, #tpu.memory_space<vmem>>, vector<1x4x16xf32>
    %cst_15 = arith.constant dense<0.000000e+00> : vector<1x4xf32>
    %11 = vector.multi_reduction <add>, %10, %cst_15 [2] : vector<1x4x16xf32> to vector<1x4xf32>
    %12 = vector.shape_cast %11 : vector<1x4xf32> to vector<1x4x1xf32>
    %13 = arith.addf %9, %12 : vector<1x4x1xf32>
    %c0_16 = arith.constant 0 : index
    %c0_17 = arith.constant 0 : index
    %c0_18 = arith.constant 0 : index
    %14 = vector.load %arg5[%c0_16, %c0_17, %c0_18] : memref<1x4x1xf32, #tpu.memory_space<vmem>>, vector<1x4x1xf32>
    tpu.vector_store %arg5[%c0_16, %c0_17, %c0_18], %13 {strides = array<i32>} : memref<1x4x1xf32, #tpu.memory_space<vmem>>, vector<1x4x1xf32>,
    %c0_i32_19 = arith.constant 0 : i32
    %15 = arith.cmpi eq, %arg1, %c0_i32_19 : i32
    %16 = arith.extui %15 : i1 to i32
    %c0_i32_20 = arith.constant 0 : i32
    %17 = arith.cmpi ne, %16, %c0_i32_20 : i32
    scf.if %17 {
      %c0_21 = arith.constant 0 : index
      %c0_22 = arith.constant 0 : index
      %c0_23 = arith.constant 0 : index
      %18 = vector.load %arg4[%c0_21, %c0_22, %c0_23] : memref<1x4x1xf32, #tpu.memory_space<vmem>>, vector<1x4x1xf32>
      %cst_24 = arith.constant 6.250000e-02 : f32
      %19 = vector.broadcast %cst_24 : f32 to vector<1x4x1xf32>
      %20 = arith.mulf %18, %19 : vector<1x4x1xf32>
      %c0_25 = arith.constant 0 : index
      %c0_26 = arith.constant 0 : index
      %c0_27 = arith.constant 0 : index
      %21 = vector.load %arg4[%c0_25, %c0_26, %c0_27] : memref<1x4x1xf32, #tpu.memory_space<vmem>>, vector<1x4x1xf32>
      tpu.vector_store %arg4[%c0_25, %c0_26, %c0_27], %20 {strides = array<i32>} : memref<1x4x1xf32, #tpu.memory_space<vmem>>, vector<1x4x1xf32>,
      %c0_28 = arith.constant 0 : index
      %c0_29 = arith.constant 0 : index
      %c0_30 = arith.constant 0 : index
      %22 = vector.load %arg5[%c0_28, %c0_29, %c0_30] : memref<1x4x1xf32, #tpu.memory_space<vmem>>, vector<1x4x1xf32>
      %cst_31 = arith.constant 6.250000e-02 : f32
      %23 = vector.broadcast %cst_31 : f32 to vector<1x4x1xf32>
      %24 = arith.mulf %22, %23 : vector<1x4x1xf32>
      %c0_32 = arith.constant 0 : index
      %c0_33 = arith.constant 0 : index
      %c0_34 = arith.constant 0 : index
      %25 = vector.load %arg5[%c0_32, %c0_33, %c0_34] : memref<1x4x1xf32, #tpu.memory_space<vmem>>, vector<1x4x1xf32>
      tpu.vector_store %arg5[%c0_32, %c0_33, %c0_34], %24 {strides = array<i32>} : memref<1x4x1xf32, #tpu.memory_space<vmem>>, vector<1x4x1xf32>,
    } else {
    }
    return
  }
  func.func @transform_0(%arg0: i32, %arg1: i32) -> (i32, i32, i32) {
    %c0_i32 = arith.constant 0 : i32
    %c0_i32_0 = arith.constant 0 : i32
    return %arg0, %c0_i32, %arg1 : i32, i32, i32
  }
  func.func @transform_1(%arg0: i32, %arg1: i32) -> (i32, i32, i32) {
    %c0_i32 = arith.constant 0 : i32
    %c0_i32_0 = arith.constant 0 : i32
    return %arg0, %c0_i32, %arg1 : i32, i32, i32
  }
  func.func @transform_2(%arg0: i32, %arg1: i32) -> (i32, i32, i32) {
    %c0_i32 = arith.constant 0 : i32
    %c0_i32_0 = arith.constant 0 : i32
    %c0_i32_1 = arith.constant 0 : i32
    return %arg0, %c0_i32, %c0_i32_0 : i32, i32, i32
  }
  func.func @transform_3(%arg0: i32, %arg1: i32) -> (i32, i32, i32) {
    %c0_i32 = arith.constant 0 : i32
    %c0_i32_0 = arith.constant 0 : i32
    %c0_i32_1 = arith.constant 0 : i32
    return %arg0, %c0_i32, %c0_i32_0 : i32, i32, i32
  }
}

</mosaic_0001>

<bundles_post_ra>
// kernel: tpu_custom_call.1
= control target key start
LH: loop header
LB: loop body
LE: loop exit
PB: predicated region body
PF: predicated region fallthrough
CT: control target
= control target key end

     0   :  { %9 = vsyncpa [#allocation3], 0  ;;  %s1017_s0 = inlined_call_operand.hbm [shape: f32[2,4,16], index: 0, kind: input, shape index: {}]   ;;  %s1018_s1 = inlined_call_operand.hbm [shape: f32[2,4,16], index: 1, kind: input, shape index: {}]   ;;  %s1019_s2 = inlined_call_operand.hbm [shape: f32[2,4,1], index: 2, kind: output, shape index: {0}]   ;;  %s1020_s3 = inlined_call_operand.hbm [shape: f32[2,4,1], index: 3, kind: output, shape index: {1}]  }
   0x1   :  { %11 = vsyncpa [#allocation3 + $0x1], 0 }
   0x2   :  { %12 = vsyncpa [#allocation6], 0 }
   0x3   :  { %14 = vsyncpa [#allocation6 + $0x1], 0 }
   0x4   :  { %15 = vsyncpa [#allocation4], 0 }
   0x5   :  { %17 = vsyncpa [#allocation4 + $0x1], 0 }
   0x6   :  { %18 = vsyncpa [#allocation9], 0 }
   0x7   :  { %20 = vsyncpa [#allocation9 + $0x1], 0  ;;  %s748_s12 = smov 0   ;;  %s750_s13 = smov 0  }
   0x8   :  { %s752_s14 = smov 0   ;;  %s754_s15 = smov 0  }
   0x9   :  { %s756_s16 = smov 0   ;;  %s758_s17 = smov 0  }
   0xa LB: > { %s451_s18 = sadd.s32 4294967295, %s721_s17   ;;  %s452_s19 = sadd.s32 4294967294, %s721_s17   ;;  %s721_s17 = sphi %s758_s17, %s26_s17   ;;  %s717_s16 = sphi %s756_s16, %s1040_s16   ;;  %s713_s15 = sphi %s754_s15, %s1039_s15   ;;  %s709_s14 = sphi %s752_s14, %s1038_s14   ;;  %s705_s13 = sphi %s750_s13, %s1037_s13   ;;  %s701_s12 = sphi %s748_s12, %s1036_s12  }
   0xb   : > { %s38_s20 = sadd.s32 1, %s717_s16  ;;  %s47_s21 = sadd.s32 1, %s709_s14 }
   0xc   : > { %p40_p0 = scmp.ge.s32.totalorder %s38_s20, 2  ;;  %p54_p1 = scmp.ne.s32.totalorder %s709_s14, %s705_s13 }
   0xd   : > { %p55_p2 = scmp.eq.s32.totalorder %s721_s17, 0  ;;  %p60_p3 = scmp.ne.s32.totalorder %s705_s13, %s701_s12 }
   0xe   : > { %s1042_s20 = smov (%p40_p0, %s38_s20), 0  ;;  %p61_p5 = scmp.eq.s32.totalorder %s451_s18, 0 }
   0xf   : > { %p789_p4 = por %p55_p2, %p54_p1  ;;  %s42_s23 = ssub.s32 %s717_s16, %s1042_s20 }
  0x10   : > { %p112_p6 = scmp.eq.s32.totalorder %s451_s18, 1  ;;  %p45_p7 = scmp.eq.s32.totalorder %s42_s23, 0 }
  0x11   : > { %p795_p8 = por %p61_p5, %p60_p3  ;;  %p118_p10 = scmp.eq.s32.totalorder %s452_s19, 1 }
  0x12   : > { %p799_p9 = por %p112_p6, %p54_p1  ;;  %p492_p13 = scmp.lt.s32.totalorder %s721_s17, 2 }
  0x13   : > { %s1024_s24 = scalar_select %p795_p8, 1, 0 }
  0x14   : > { %s1025_s25 = scalar_select %p799_p9, 1, 0 }
  0x15   : > { %s804_s26 = scalar_select %p45_p7, %s709_s14, %s47_s21  }
  0x16   : > { %p806_p11 = por %p118_p10, %p60_p3  ;;  %s813_s28 = sand.u32 1, %s709_s14  }
  0x17   : > { %s455_s29 = sshll.u32 %s813_s28, 2  ;;  %s456_s30 = sshll.u32 %s717_s16, 6 }
  0x18   : > { %s1026_s27 = scalar_select %p806_p11, 1, 0 }
  0x19   : > { %s822_s6 = scalar_lea.hbm %s1017_s0, %s456_s30  ;;  %s168_s7 = scalar_lea.vmem [#allocation2], %s455_s29 }
  0x1a   : > { %s176_s8 = sshll.u32 %s168_s7, 4  ;;  %p830_p0 = pnand %p492_p13, %p789_p4  ;;  %s826_s8 = int_to_ptr.vmem [resolvable:$true] %s176_s8 }
  0x1b   : > { %s165_s10 = scalar_lea.sflag [#allocation3], %s813_s28  ;;  %s543_s11 = scalar_lea.hbm %s822_s6, 64 }
  0x1c   : > { %p544_p3 = scmp.ne.s32.totalorder %s822_s6, %s543_s11  ;;  %p545_p5 = pneg %p830_p0 }
  0x1d   : > { %s548_s21 = scalar_lea.hbm %s1017_s0, 128  ;;  %p549_p4 = scmp.lt.u32.totalorder %s822_s6, %s1017_s0 }
  0x1e   : > { %p546_p6 = pnand %p545_p5, %p544_p3  ;;  %p550_p10 = scmp.lt.u32.totalorder %s548_s21, %s543_s11 }
  0x1f   : > { %p552_p12 = scmp.lt.u32.totalorder %s543_s11, %s822_s6 }
  0x20   : > { %p547_p7 = pneg %p546_p6  ;;  %p551_p13 = por %p550_p10, %p549_p4 }
  0x22   : > { %p553_p1 = por %p552_p12, %p551_p13 }
  0x24   : > { %p554_p2 = pnand %p553_p1, %p547_p7 }
  0x26   : > { %557 = shalt.err (!%p554_p2)
}
  0x27   : > { %s558_s4 = scalar_lea.vmem %s826_s8, 64  ;;  %s723_s5 = smov [#allocation2]  }
  0x28   : > { %p559_p3 = scmp.ne.s32.totalorder %s826_s8, %s558_s4  ;;  %s563_s7 = sshll.u32 %s723_s5, 4  ;;  %s564_s7 = int_to_ptr.vmem [resolvable:$false] %s563_s7 }
  0x29   : > { %s565_s18 = scalar_lea.vmem %s564_s7, 128  ;;  %p566_p9 = scmp.lt.s32.totalorder %s826_s8, %s564_s7 }
  0x2a   : > { %p561_p6 = pnand %p559_p3, %p545_p5  ;;  %p567_p4 = scmp.lt.s32.totalorder %s565_s18, %s558_s4 }
  0x2c   : > { %p562_p11 = pneg %p561_p6  ;;  %p568_p10 = por %p567_p4, %p566_p9 }
  0x2e   : > { %p569_p12 = pnand %p568_p10, %p562_p11 }
  0x30   : > { %572 = shalt.err (!%p569_p12)
}
  0x31   : > { %481 = dma.hbm_to_vmem [thread:$0]  (!%p830_p0), %s822_s6, 64, %s826_s8, %s165_s10  }
  0x32   : > { %p1028_p1 = scmp.lt.s32.totalorder %s721_s17, 3  ;;  %p1029_p2 = scmp.ge.s32.totalorder %s721_s17, 1 }
  0x33   : > { %s875_s22 = scalar_lea.hbm %s1018_s1, %s456_s30  ;;  %s187_s23 = scalar_lea.vmem [#allocation5], %s455_s29 }
  0x34   : > { %p866_p7 = pnand %p1029_p2, %p1028_p1  ;;  %s195_s4 = sshll.u32 %s187_s23, 4  ;;  %s196_s4 = int_to_ptr.vmem [resolvable:$true] %s195_s4 }
  0x35   : > { %s184_s6 = scalar_lea.sflag [#allocation6], %s813_s28  ;;  %s573_s8 = scalar_lea.hbm %s875_s22, 64 }
  0x36   : > { %s1030_s11 = scalar_select %p866_p7, 1, 0 }
  0x37   : > { %p574_p9 = scmp.ne.s32.totalorder %s875_s22, %s573_s8  ;;  %s578_s30 = scalar_lea.hbm %s1018_s1, 128 }
  0x38   : > { %p579_p3 = scmp.lt.u32.totalorder %s875_s22, %s1018_s1  ;;  %p580_p6 = scmp.lt.u32.totalorder %s578_s30, %s573_s8 }
  0x39   : > { %p576_p11 = pnand %p574_p9, %p545_p5  ;;  %p582_p10 = scmp.lt.u32.totalorder %s573_s8, %s875_s22 }
  0x3a   : > { %p581_p4 = por %p580_p6, %p579_p3 }
  0x3b   : > { %p577_p13 = pneg %p576_p11 }
  0x3c   : > { %p583_p12 = por %p582_p10, %p581_p4 }
  0x3e   : > { %p584_p1 = pnand %p583_p12, %p577_p13 }
  0x40   : > { %587 = shalt.err (!%p584_p1)
}
  0x41   : > { %s588_s28 = scalar_lea.vmem %s196_s4, 64  ;;  %s724_s29 = smov [#allocation5]  }
  0x42   : > { %p589_p2 = scmp.ne.s32.totalorder %s196_s4, %s588_s28  ;;  %s593_s19 = sshll.u32 %s724_s29, 4  ;;  %s594_s19 = int_to_ptr.vmem [resolvable:$false] %s593_s19 }
  0x43   : > { %s595_s21 = scalar_lea.vmem %s594_s19, 128  ;;  %p596_p8 = scmp.lt.s32.totalorder %s196_s4, %s594_s19 }
  0x44   : > { %p591_p9 = pnand %p589_p2, %p545_p5  ;;  %p597_p7 = scmp.lt.s32.totalorder %s595_s21, %s588_s28 }
  0x46   : > { %p592_p11 = pneg %p591_p9  ;;  %p598_p3 = por %p597_p7, %p596_p8 }
  0x48   : > { %p599_p6 = pnand %p598_p3, %p592_p11 }
  0x4a   : > { %602 = shalt.err (!%p599_p6)
}
  0x4b   : > { %484 = dma.hbm_to_vmem [thread:$0]  (!%p830_p0), %s875_s22, 64, %s196_s4, %s184_s6  }
  0x4c   : > { %p1031_p13 = scmp.ne.s32.totalorder %s1030_s11, 0 }
  0x4d   : > { %s902_s23 = sand.u32 (!%p1031_p13), 1, %s705_s13   ;;  %p1032_p5 = scmp.ne.s32.totalorder (!%p1031_p13), %s1024_s24, 0 }
  0x4e   : > { %204 = sbr.rel (%p1031_p13) target bundleno = 282 (0x11a), region = 28  ;;  %s460_s8 = sshll.u32 (!%p1031_p13), %s902_s23, 2 }
  0x4f   : > { %s207_s10 = scalar_lea.sflag (!%p1031_p13), [#allocation3], %s902_s23  ;;  %s210_s5 = scalar_lea.vmem (!%p1031_p13), [#allocation2], %s460_s8 }
  0x55   : > { %684 = dma.done.wait (%p1032_p5), %s207_s10, 64  }
  0x56   : > { %686 = vsyncadd (%p1032_p5), %s207_s10, 4294967232  ;;  %s216_s9 = scalar_lea.sflag [#allocation6], %s902_s23  ;;  %s219_s22 = scalar_lea.vmem [#allocation5], %s460_s8 }
  0x57   : > { %688 = dma.done.wait (%p1032_p5), %s216_s9, 64  }
  0x58   : > { %690 = vsyncadd (%p1032_p5), %s216_s9, 4294967232  ;;  %vm256_vm0 = vcmask 3072   ;;  %s244_s11 = scalar_lea.vmem [#allocation7], %s460_s8  ;;  %v725_v0 = vmov 0.0   ;;  %vm261_vm1 = vcmask 125952   ;;  %s916_s4 = scalar_lea.vmem [#allocation8], %s460_s8 }
  0x59   : > { %257 = vst.msk [vmem:[%s244_s11] sm:$0xf] %vm256_vm0, %v725_v0  ;;  %v260_v1 = vld [vmem:[%s210_s5] sm:$0xf]  ;;  %v269_v2 = vld [vmem:[%s219_s22] sm:$0xf] }
  0x5a   : > { %v262_v3 = vsel %vm261_vm1, %v260_v1, 0.0  ;;  %v270_v4 = vsel %vm261_vm1, %v269_v2, 0.0  ;;  %258 = vst.msk [vmem:[%s916_s4] sm:$0xf] %vm256_vm0, %v725_v0  ;;  %s466_s24 = sshll.u32 %s713_s15, 6  ;;  %s303_s6 = sshll.u32 %s244_s11, 4  ;;  %s932_s6 = int_to_ptr.vmem [resolvable:$true] %s303_s6 }
  0x5b   : > { %263 = vadd.xlane.f32.xlu0 %v262_v3  ;;  %s930_s18 = scalar_lea.hbm %s1019_s2, %s466_s24  ;;  %s316_s28 = sshll.u32 %s916_s4, 4  ;;  %s968_s28 = int_to_ptr.vmem [resolvable:$true] %s316_s28 }
  0x5c   : > { %s285_s29 = scalar_lea.sflag [#allocation4], %s902_s23  ;;  %s603_s19 = scalar_lea.vmem %s932_s6, 64 }
  0x5d   : > { %p604_p8 = scmp.ne.s32.totalorder %s932_s6, %s603_s19  ;;  %p1033_p0 = scmp.ne.s32.totalorder %s1025_s25, 0 }
  0x5e   : > { %s726_s21 = smov [#allocation7]  }
  0x5f   : > { %271 = vadd.xlane.f32.xlu0 %v270_v4  ;;  %p605_p7 = pnand %p604_p8, %p1033_p0  ;;  %s607_s8 = sshll.u32 %s726_s21, 4  ;;  %s608_s8 = int_to_ptr.vmem [resolvable:$false] %s607_s8 }
  0x60   : > { %v259_v5 = vld [vmem:[%s244_s11] sm:$0xf]  ;;  %s609_s10 = scalar_lea.vmem %s608_s8, 128  ;;  %p610_p10 = scmp.lt.s32.totalorder %s932_s6, %s608_s8 }
  0x61   : > { %v268_v8 = vld [vmem:[%s916_s4] sm:$0xf]  ;;  %p606_p4 = pneg %p605_p7  ;;  %p611_p12 = scmp.lt.s32.totalorder %s609_s10, %s603_s19 }
  0x63   : > { %p612_p1 = por %p611_p12, %p610_p10 }
  0x65   : > { %p613_p2 = pnand %p612_p1, %p606_p4 }
  0xe8   : > { %v264_v6 = vpop.xlane.xlu0 %263 }
  0xe9   : > { %v265_v7 = vadd.f32 %v264_v6, %v259_v5 }
  0xeb   : > { %267 = vst.msk [vmem:[%s244_s11] sm:$0xf] %vm256_vm0, %v265_v7 }
  0xec   : > { %v272_v9 = vpop.xlane.xlu0 %271 }
  0xed   : > { %v273_v10 = vadd.f32 %v272_v9, %v268_v8 }
  0xef   : > { %274 = vst.msk [vmem:[%s916_s4] sm:$0xf] %vm256_vm0, %v273_v10 }
  0xf2   : > { %v278_v11 = vld [vmem:[%s244_s11] sm:$0xf] }
  0xf3   : > { %v279_v12 = vmul.f32 0.0625, %v278_v11 }
  0xf5   : > { %280 = vst.msk [vmem:[%s244_s11] sm:$0xf] %vm256_vm0, %v279_v12 }
  0xf6   : > { %616 = shalt.err (!%p613_p2)
}
  0xf7   : > { %s617_s5 = scalar_lea.hbm %s930_s18, 64  ;;  %s621_s11 = scalar_lea.hbm %s1019_s2, 128 }
  0xf8   : > { %p618_p9 = scmp.ne.s32.totalorder %s930_s18, %s617_s5  ;;  %p622_p6 = scmp.lt.u32.totalorder %s930_s18, %s1019_s2 }
  0xf9   : > { %p623_p13 = scmp.lt.u32.totalorder %s621_s11, %s617_s5  ;;  %p625_p8 = scmp.lt.u32.totalorder %s617_s5, %s930_s18 }
  0xfa   : > { %p619_p11 = pnand %p618_p9, %p1033_p0 }
  0xfb   : > { %p624_p5 = por %p623_p13, %p622_p6 }
  0xfc   : > { %p620_p3 = pneg %p619_p11 }
  0xfd   : > { %p626_p7 = por %p625_p8, %p624_p5 }
  0xff   : > { %p627_p4 = pnand %p626_p7, %p620_p3 }
 0x101   : > { %630 = shalt.err (!%p627_p4)
}
 0x102   : > { %474 = dma.vmem_to_hbm [thread:$0]  (%p1033_p0), %s932_s6, 64, %s930_s18, %s285_s29   ;;  %v281_v13 = vld [vmem:[%s916_s4] sm:$0xf] }
 0x103   : > { %v282_v14 = vmul.f32 0.0625, %v281_v13  ;;  %s964_s8 = scalar_lea.hbm %s1020_s3, %s466_s24  ;;  %s290_s10 = scalar_lea.sflag [#allocation9], %s902_s23 }
 0x104   : > { %s631_s5 = scalar_lea.vmem %s968_s28, 64  ;;  %s727_s15 = smov [#allocation8]  }
 0x105   : > { %283 = vst.msk [vmem:[%s916_s4] sm:$0xf] %vm256_vm0, %v282_v14  ;;  %p632_p10 = scmp.ne.s32.totalorder %s968_s28, %s631_s5  ;;  %s635_s6 = sshll.u32 %s727_s15, 4  ;;  %s636_s6 = int_to_ptr.vmem [resolvable:$false] %s635_s6 }
 0x106   : > { %s637_s18 = scalar_lea.vmem %s636_s6, 128  ;;  %p638_p2 = scmp.lt.s32.totalorder %s968_s28, %s636_s6 }
 0x107   : > { %p633_p12 = pnand %p632_p10, %p1033_p0  ;;  %p639_p9 = scmp.lt.s32.totalorder %s637_s18, %s631_s5 }
 0x109   : > { %p634_p1 = pneg %p633_p12  ;;  %p640_p11 = por %p639_p9, %p638_p2 }
 0x10b   : > { %p641_p3 = pnand %p640_p11, %p634_p1 }
 0x10d   : > { %644 = shalt.err (!%p641_p3)
}
 0x10e   : > { %s645_s23 = scalar_lea.hbm %s964_s8, 64  ;;  %s649_s29 = scalar_lea.hbm %s1020_s3, 128 }
 0x10f   : > { %p646_p6 = scmp.ne.s32.totalorder %s964_s8, %s645_s23  ;;  %p650_p8 = scmp.lt.u32.totalorder %s964_s8, %s1020_s3 }
 0x110   : > { %p651_p7 = scmp.lt.u32.totalorder %s649_s29, %s645_s23  ;;  %p653_p10 = scmp.lt.u32.totalorder %s645_s23, %s964_s8 }
 0x111   : > { %p647_p13 = pnand %p646_p6, %p1033_p0 }
 0x112   : > { %p652_p4 = por %p651_p7, %p650_p8 }
 0x113   : > { %p648_p5 = pneg %p647_p13 }
 0x114   : > { %p654_p12 = por %p653_p10, %p652_p4 }
 0x116   : > { %p655_p1 = pnand %p654_p12, %p648_p5 }
 0x118   : > { %658 = shalt.err (!%p655_p1)
}
 0x119   : > { %475 = dma.vmem_to_hbm [thread:$0]  (%p1033_p0), %s968_s28, 64, %s964_s8, %s290_s10  }
 0x11a PF: > { %s328_s11 = sand.u32 1, %s701_s12   ;;  %p1034_p2 = scmp.ne.s32.totalorder %s1026_s27, 0 }
 0x11b   : > { %p1035_p9 = scmp.ge.s32.totalorder %s721_s17, 2  ;;  %s329_s30 = scalar_lea.sflag [#allocation4], %s328_s11 }
 0x11d   : > { %p486_p11 = pnand %p1035_p9, %p1034_p2 }
 0x11f   : > { %692 = dma.done.wait (!%p486_p11), %s329_s30, 64  }
 0x120   : > { %694 = vsyncadd (!%p486_p11), %s329_s30, 4294967232  ;;  %s338_s7 = scalar_lea.sflag [#allocation9], %s328_s11 }
 0x121   : > { %696 = dma.done.wait (!%p486_p11), %s338_s7, 64  }
 0x122   : > { %698 = vsyncadd (!%p486_p11), %s338_s7, 4294967232  ;;  %s26_s17 = sadd.s32 1, %s721_s17   ;;  %s1036_s12 = smov %s705_s13 }
 0x123   : > { %p23_p3 = scmp.ge.s32.totalorder %s26_s17, 4   ;;  %s1037_s13 = smov %s709_s14 }
 0x124   : > { %s1038_s14 = smov %s804_s26  ;;  %s1039_s15 = smov %s717_s16 }
 0x125   : > { %s1040_s16 = smov %s1042_s20  ;;  %25 = sbr.rel (!%p23_p3) target bundleno = 10 (0xa), region = 111 }
 0x12c   :  { %343 = vsyncpa [#allocation3], 1 }
 0x12d   :  { %345 = vsyncpa [#allocation3 + $0x1], 1 }
 0x12e   :  { %346 = vsyncpa [#allocation6], 1 }
 0x12f   :  { %348 = vsyncpa [#allocation6 + $0x1], 1 }
 0x130   :  { %349 = vsyncpa [#allocation4], 1 }
 0x131   :  { %351 = vsyncpa [#allocation4 + $0x1], 1 }
 0x132   :  { %352 = vsyncpa [#allocation9], 1 }
 0x133   :  { %354 = vsyncpa [#allocation9 + $0x1], 1 }

</bundles_post_ra>
